<compile_context>
chip_gen: v5e
topology: v5e:2x2
jax: 0.10.0
libtpu: 0.0.40
codegen_flags: <defaults>
</compile_context>

<pallas_src>
import functools

import jax
import jax.numpy as jnp
from jax.experimental import pallas as pl
from jax.experimental.pallas import tpu as pltpu


def _make_divisible(v, divisor, min_value=None):
    if min_value is None:
        min_value = divisor
    new_v = max(min_value, int(v + divisor / 2) // divisor * divisor)
    if new_v < 0.9 * v:
        new_v += divisor
    return new_v


def _round_up(v, m):
    return (v + m - 1) // m * m


# ---------------------------------------------------------------------------
# Kernels
# ---------------------------------------------------------------------------

def _se_fused_kernel(x_ref, w1_ref, b1_ref, w2_ref, b2_ref, o_ref):
    """One batch-fold block: pool -> FC(SiLU) -> FC -> hard_sigmoid -> gate."""
    x = x_ref[...]                                              # (nb, C, HW), native dtype
    inv_hw = 1.0 / x.shape[-1]
    # Global average pool with f32 accumulation (no full f32 copy kept live).
    pooled = jnp.sum(x, axis=-1, dtype=jnp.float32) * inv_hw    # (nb, C) f32
    # conv_reduce (1x1 conv == channel matmul) + bias, SiLU (module's act_layer).
    red = jnp.dot(pooled, w1_ref[...],
                  preferred_element_type=jnp.float32) + b1_ref[...]      # (nb, Cr)
    red = red * jax.nn.sigmoid(red)
    # conv_expand + bias.
    exp = jnp.dot(red, w2_ref[...],
                  preferred_element_type=jnp.float32) + b2_ref[...]      # (nb, C)
    # hard_sigmoid gate: relu6(x + 3) / 6.
    gate = jnp.clip(exp + 3.0, 0.0, 6.0) * (1.0 / 6.0)                   # (nb, C) f32
    # Channel gating in the transport dtype (bf16 VALU on v6e/v7x; f32 stays f32).
    o_ref[...] = (x * gate.astype(x.dtype)[:, :, None]).astype(o_ref.dtype)


def _se_pool_gate_kernel(hw_total, needs_mask,
                         x_ref, w1_ref, b1_ref, w2_ref, b2_ref,
                         gate_ref, acc_ref):
    """Fallback pass 1: pool over HW chunks (arbitrary axis), emit (1, C, 1) gate."""
    j = pl.program_id(1)

    @pl.when(j == 0)
    def _init():
        acc_ref[...] = jnp.zeros_like(acc_ref)

    x = x_ref[...]                                              # (1, C, hw_chunk)
    if needs_mask:
        # Last chunk is partial: zero out the out-of-bounds padding lanes.
        chunk = x.shape[-1]
        pos = jax.lax.broadcasted_iota(jnp.int32, x.shape, 2) + j * chunk
        x = jnp.where(pos < hw_total, x, jnp.zeros_like(x))
    acc_ref[...] += jnp.sum(x, axis=-1, dtype=jnp.float32)       # (1, C) f32

    @pl.when(j == pl.num_programs(1) - 1)
    def _finalize():
        pooled = acc_ref[...] * (1.0 / hw_total)                 # (1, C) f32
        red = jnp.dot(pooled, w1_ref[...],
                      preferred_element_type=jnp.float32) + b1_ref[...]
        red = red * jax.nn.sigmoid(red)                          # SiLU
        exp = jnp.dot(red, w2_ref[...],
                      preferred_element_type=jnp.float32) + b2_ref[...]
        gate = jnp.clip(exp + 3.0, 0.0, 6.0) * (1.0 / 6.0)       # hard_sigmoid
        gate_ref[...] = gate[:, :, None]                         # (1, C, 1)


def _se_apply_kernel(x_ref, gate_ref, o_ref):
    """Fallback pass 2: out = x * gate, chunked over HW."""
    x = x_ref[...]                                               # (1, C, hw_chunk)
    g = gate_ref[...].astype(x.dtype)                            # (1, C, 1)
    o_ref[...] = (x * g).astype(o_ref.dtype)


# ---------------------------------------------------------------------------
# Tiling heuristics
# ---------------------------------------------------------------------------

def _vmem_budgets():
    """(per x-block budget, vmem_limit cap) derived from the actual chip."""
    cap = 64 << 20                       # conservative default: v7x per-TC VMEM
    try:
        info = pltpu.get_tpu_info()
        cap = int(getattr(info, "vmem_capacity_bytes", cap)) or cap
    except Exception:
        pass
    usable = int(cap * 0.70)             # headroom for compiler-internal scratch
    # 4 blocks live at once (double-buffered in + out) plus weights/scratch.
    block_budget = max(1 << 20, (usable - (8 << 20)) // 4)
    return block_budget, usable


def _pick_batch_fold(n, per_sample_bytes, budget_bytes, *,
                     target_block_bytes=2 << 20, min_steps=4):
    """Smallest batch fold whose x-block reaches ~target_block_bytes, subject to
    the VMEM budget and keeping >= min_steps grid steps (when n allows), so the
    pipeline has depth to hide prologue/epilogue and v7x's two TensorCores each
    receive multiple steps."""
    eff_min_steps = min(n, min_steps)
    best = 1
    for nb in range(1, n + 1):
        if n % nb:
            continue
        if nb * per_sample_bytes > budget_bytes or (n // nb) < eff_min_steps:
            break
        best = nb
        if nb * per_sample_bytes >= target_block_bytes:
            break
    return best


def _pick_hw_chunk(hw, c, itemsize, budget_bytes):
    """HW chunk for the fallback path: multiple of 128 (lane-dense blocks),
    sized to the VMEM budget; the tail chunk is handled by in-kernel masking."""
    if hw <= 128:
        return hw
    chunk = max(128, (budget_bytes // max(1, c * itemsize)) // 128 * 128)
    return int(min(chunk, _round_up(hw, 128)))


# ---------------------------------------------------------------------------
# Wrapper
# ---------------------------------------------------------------------------

def squeeze_excite(x_nchw, w_reduce, b_reduce, w_expand, b_expand, *,
                   donate_input=False, block_budget_bytes=None):
    """GhostNet-style SqueezeExcite forward.

    x_nchw:   (N, C, H, W) activation (NCHW like the PyTorch module).
    w_reduce: (Cr, C) or (Cr, C, 1, 1); b_reduce: (Cr,).
    w_expand: (C, Cr) or (C, Cr, 1, 1); b_expand: (C,).
    donate_input: alias x's HBM buffer to the output.  Only enable when the
        caller no longer needs x (e.g. inside a jit that donates it); default
        off so the caller's x is never clobbered.
    block_budget_bytes: optional override of the per-block VMEM budget
        (clamped to the chip-derived safe value).
    """
    N, C, H, W = x_nchw.shape
    Cr = int(b_reduce.shape[0])
    HW = H * W
    x = x_nchw.reshape(N, C, HW)

    # 1x1 conv weights as (in, out) row-major matrices; biases as (1, ·) rows
    # that broadcast over the batch-fold sublanes.  FC math stays in f32.
    w1 = jnp.asarray(w_reduce, jnp.float32).reshape(Cr, C).T      # (C, Cr)
    b1 = jnp.asarray(b_reduce, jnp.float32).reshape(1, Cr)
    w2 = jnp.asarray(w_expand, jnp.float32).reshape(C, Cr).T      # (Cr, C)
    b2 = jnp.asarray(b_expand, jnp.float32).reshape(1, C)

    itemsize = jnp.dtype(x.dtype).itemsize
    per_sample = C * HW * itemsize
    weight_bytes = (2 * C * Cr + C + Cr) * 4

    auto_budget, vmem_cap = _vmem_budgets()
    block_budget = auto_budget if block_budget_bytes is None else int(
        min(block_budget_bytes, auto_budget))

    def _vmem_limit(block_bytes):
        need = 4 * block_bytes + 8 * weight_bytes + (2 << 20)
        return int(min(max(need, 32 << 20), vmem_cap))

    # ---------------- Fused single-pass path ----------------
    if per_sample <= block_budget:
        nb = _pick_batch_fold(N, per_sample, block_budget)
        block_bytes = nb * per_sample

        out = pl.pallas_call(
            _se_fused_kernel,
            out_shape=jax.ShapeDtypeStruct((N, C, HW), x.dtype),
            grid_spec=pltpu.PrefetchScalarGridSpec(
                num_scalar_prefetch=0,
                grid=(N // nb,),
                in_specs=[
                    pl.BlockSpec((nb, C, HW), lambda i: (i, 0, 0)),   # x
                    pl.BlockSpec((C, Cr), lambda i: (0, 0)),          # w_reduce^T
                    pl.BlockSpec((1, Cr), lambda i: (0, 0)),          # b_reduce
                    pl.BlockSpec((Cr, C), lambda i: (0, 0)),          # w_expand^T
                    pl.BlockSpec((1, C), lambda i: (0, 0)),           # b_expand
                ],
                out_specs=pl.BlockSpec((nb, C, HW), lambda i: (i, 0, 0)),
            ),
            compiler_params=pltpu.CompilerParams(
                dimension_semantics=("parallel",),
                vmem_limit_bytes=_vmem_limit(block_bytes),
            ),
            input_output_aliases=({0: 0} if donate_input else {}),
        )(x, w1, b1, w2, b2)
        return out.reshape(N, C, H, W)

    # ---------------- Two-pass HW-chunked fallback ----------------
    hw_chunk = _pick_hw_chunk(HW, C, itemsize, block_budget)
    n_hw = pl.cdiv(HW, hw_chunk)
    needs_mask = (HW % hw_chunk) != 0
    block_bytes = C * hw_chunk * itemsize

    # Pass 1: pool over HW chunks (sequential "arbitrary" axis), FC + gate.
    gate = pl.pallas_call(
        functools.partial(_se_pool_gate_kernel, HW, needs_mask),
        out_shape=jax.ShapeDtypeStruct((N, C, 1), jnp.float32),
        grid_spec=pltpu.PrefetchScalarGridSpec(
            num_scalar_prefetch=0,
            grid=(N, n_hw),
            in_specs=[
                pl.BlockSpec((1, C, hw_chunk), lambda i, j: (i, 0, j)),
                pl.BlockSpec((C, Cr), lambda i, j: (0, 0)),
                pl.BlockSpec((1, Cr), lambda i, j: (0, 0)),
                pl.BlockSpec((Cr, C), lambda i, j: (0, 0)),
                pl.BlockSpec((1, C), lambda i, j: (0, 0)),
            ],
            out_specs=pl.BlockSpec((1, C, 1), lambda i, j: (i, 0, 0)),
            scratch_shapes=[pltpu.VMEM((1, C), jnp.float32)],
        ),
        compiler_params=pltpu.CompilerParams(
            dimension_semantics=("parallel", "arbitrary"),
            vmem_limit_bytes=_vmem_limit(block_bytes),
        ),
    )(x, w1, b1, w2, b2)

    # Pass 2: apply the per-channel gate chunk by chunk (fully parallel).
    out = pl.pallas_call(
        _se_apply_kernel,
        out_shape=jax.ShapeDtypeStruct((N, C, HW), x.dtype),
        grid_spec=pltpu.PrefetchScalarGridSpec(
            num_scalar_prefetch=0,
            grid=(N, n_hw),
            in_specs=[
                pl.BlockSpec((1, C, hw_chunk), lambda i, j: (i, 0, j)),
                pl.BlockSpec((1, C, 1), lambda i, j: (i, 0, 0)),
            ],
            out_specs=pl.BlockSpec((1, C, hw_chunk), lambda i, j: (i, 0, j)),
        ),
        compiler_params=pltpu.CompilerParams(
            dimension_semantics=("parallel", "parallel"),
            vmem_limit_bytes=_vmem_limit(block_bytes),
        ),
        input_output_aliases=({0: 0} if donate_input else {}),
    )(x, gate)

    return out.reshape(N, C, H, W)


# ---------------------------------------------------------------------------
# Test
# ---------------------------------------------------------------------------

if __name__ == "__main__":
    N, C, H, W = 2, 16, 16, 16
    se_ratio, divisor = 0.25, 4
    Cr = _make_divisible(C * se_ratio, divisor)        # = 4

    key = jax.random.PRNGKey(0)
    kx, k1, kb1, k2, kb2, kx2 = jax.random.split(key, 6)
    x = jax.random.normal(kx, (N, C, H, W), dtype=jnp.float32)
    # Synthetic 1x1-conv parameters (flattened to 2D).
    w_reduce = jax.random.normal(k1, (Cr, C), dtype=jnp.float32) * 0.1
    b_reduce = jax.random.normal(kb1, (Cr,), dtype=jnp.float32) * 0.1
    w_expand = jax.random.normal(k2, (C, Cr), dtype=jnp.float32) * 0.1
    b_expand = jax.random.normal(kb2, (C,), dtype=jnp.float32) * 0.1

    def reference(xx):
        pooled = jnp.mean(xx, axis=(2, 3))                       # avg_pool
        red = pooled @ w_reduce.T + b_reduce                     # conv_reduce
        red = red * jax.nn.sigmoid(red)                          # SiLU (act_layer)
        expd = red @ w_expand.T + b_expand                       # conv_expand
        gate = jnp.clip(expd + 3.0, 0.0, 6.0) / 6.0              # hard_sigmoid
        return xx * gate[:, :, None, None]

    # 1) Fused single-pass path (lane-dense HW=256).
    ref = jax.block_until_ready(reference(x))
    out = jax.block_until_ready(
        squeeze_excite(x, w_reduce, b_reduce, w_expand, b_expand))
    assert out.shape == x.shape and out.dtype == x.dtype
    assert jnp.allclose(out, ref, atol=1e-5, rtol=1e-5)

    # 2) Non-128-multiple spatial size (HW=144) on the fused path.
    x2 = jax.random.normal(kx2, (N, C, 12, 12), dtype=jnp.float32)
    ref2 = jax.block_until_ready(reference(x2))
    out2 = jax.block_until_ready(
        squeeze_excite(x2, w_reduce, b_reduce, w_expand, b_expand))
    assert jnp.allclose(out2, ref2, atol=1e-5, rtol=1e-5)

    # 3) Two-pass HW-chunked fallback, forced via a tiny block budget
    #    (exercises pool accumulation across chunks + masked tail chunk).
    out3 = jax.block_until_ready(
        squeeze_excite(x2, w_reduce, b_reduce, w_expand, b_expand,
                       block_budget_bytes=4096))
    assert out3.shape == x2.shape and out3.dtype == x2.dtype
    assert jnp.allclose(out3, ref2, atol=1e-5, rtol=1e-5)

    print("KERNEL_OK")
</pallas_src>

<mosaic_0001>
module attributes {stable_mosaic.version = 11 : i64} {
  func.func @_se_fused_kernel(%arg0: i32, %arg1: memref<1x16x256xf32, #tpu.memory_space<vmem>>, %arg2: memref<16x4xf32, #tpu.memory_space<vmem>>, %arg3: memref<1x4xf32, #tpu.memory_space<vmem>>, %arg4: memref<4x16xf32, #tpu.memory_space<vmem>>, %arg5: memref<1x16xf32, #tpu.memory_space<vmem>>, %arg6: memref<1x16x256xf32, #tpu.memory_space<vmem>>) attributes {dimension_semantics = [#tpu.dimension_semantics<parallel>], iteration_bounds = array<i64: 2>, scalar_prefetch = 0 : i64, scratch_operands = 0 : i64, tpu.core_type = #tpu.core_type<tc>, window_params = [{transform_indices = @transform_0, window_bounds = array<i64: 1, 16, 256>}, {pipeline_mode = #tpu.pipeline_mode<synchronous>, transform_indices = @transform_1, window_bounds = array<i64: 16, 4>}, {pipeline_mode = #tpu.pipeline_mode<synchronous>, transform_indices = @transform_2, window_bounds = array<i64: 1, 4>}, {pipeline_mode = #tpu.pipeline_mode<synchronous>, transform_indices = @transform_3, window_bounds = array<i64: 4, 16>}, {pipeline_mode = #tpu.pipeline_mode<synchronous>, transform_indices = @transform_4, window_bounds = array<i64: 1, 16>}, {transform_indices = @transform_5, window_bounds = array<i64: 1, 16, 256>}]} {
    %c0 = arith.constant 0 : index
    %c0_0 = arith.constant 0 : index
    %c0_1 = arith.constant 0 : index
    %0 = vector.load %arg1[%c0, %c0_0, %c0_1] : memref<1x16x256xf32, #tpu.memory_space<vmem>>, vector<1x16x256xf32>
    %cst = arith.constant dense<0.000000e+00> : vector<1x16xf32>
    %1 = vector.multi_reduction <add>, %0, %cst [2] : vector<1x16x256xf32> to vector<1x16xf32>
    %cst_2 = arith.constant 3.906250e-03 : f32
    %2 = vector.broadcast %cst_2 : f32 to vector<1x16xf32>
    %3 = arith.mulf %1, %2 : vector<1x16xf32>
    %c0_3 = arith.constant 0 : index
    %c0_4 = arith.constant 0 : index
    %4 = vector.load %arg2[%c0_3, %c0_4] : memref<16x4xf32, #tpu.memory_space<vmem>>, vector<16x4xf32>
    %cst_5 = arith.constant dense<0.000000e+00> : vector<1x4xf32>
    %5 = tpu.matmul %3, %4, %cst_5 {dimension_numbers = #tpu.dot_dimension_numbers<[1], [0], [0], [1], [0, 0, 1, 1], [], []>} : vector<1x16xf32>, vector<16x4xf32>, vector<1x4xf32> -> vector<1x4xf32>
    %c0_6 = arith.constant 0 : index
    %c0_7 = arith.constant 0 : index
    %6 = vector.load %arg3[%c0_6, %c0_7] : memref<1x4xf32, #tpu.memory_space<vmem>>, vector<1x4xf32>
    %7 = arith.addf %5, %6 : vector<1x4xf32>
    %8 = arith.negf %7 : vector<1x4xf32>
    %9 = math.exp %8 : vector<1x4xf32>
    %cst_8 = arith.constant 1.000000e+00 : f32
    %10 = vector.broadcast %cst_8 : f32 to vector<1x4xf32>
    %11 = arith.addf %10, %9 : vector<1x4xf32>
    %12 = arith.divf %10, %11 : vector<1x4xf32>
    %13 = arith.mulf %7, %12 : vector<1x4xf32>
    %c0_9 = arith.constant 0 : index
    %c0_10 = arith.constant 0 : index
    %14 = vector.load %arg4[%c0_9, %c0_10] : memref<4x16xf32, #tpu.memory_space<vmem>>, vector<4x16xf32>
    %cst_11 = arith.constant dense<0.000000e+00> : vector<1x16xf32>
    %15 = tpu.matmul %13, %14, %cst_11 {dimension_numbers = #tpu.dot_dimension_numbers<[1], [0], [0], [1], [0, 0, 1, 1], [], []>} : vector<1x4xf32>, vector<4x16xf32>, vector<1x16xf32> -> vector<1x16xf32>
    %c0_12 = arith.constant 0 : index
    %c0_13 = arith.constant 0 : index
    %16 = vector.load %arg5[%c0_12, %c0_13] : memref<1x16xf32, #tpu.memory_space<vmem>>, vector<1x16xf32>
    %17 = arith.addf %15, %16 : vector<1x16xf32>
    %cst_14 = arith.constant 3.000000e+00 : f32
    %18 = vector.broadcast %cst_14 : f32 to vector<1x16xf32>
    %19 = arith.addf %17, %18 : vector<1x16xf32>
    %cst_15 = arith.constant 0.000000e+00 : f32
    %cst_16 = arith.constant 6.000000e+00 : f32
    %20 = vector.broadcast %cst_15 : f32 to vector<1x16xf32>
    %21 = arith.maximumf %20, %19 : vector<1x16xf32>
    %22 = vector.broadcast %cst_16 : f32 to vector<1x16xf32>
    %23 = arith.minimumf %22, %21 : vector<1x16xf32>
    %cst_17 = arith.constant 0.166666672 : f32
    %24 = vector.broadcast %cst_17 : f32 to vector<1x16xf32>
    %25 = arith.mulf %23, %24 : vector<1x16xf32>
    %26 = vector.shape_cast %25 : vector<1x16xf32> to vector<1x16x1xf32>
    %27 = vector.broadcast %26 : vector<1x16x1xf32> to vector<1x16x256xf32>
    %28 = arith.mulf %0, %27 : vector<1x16x256xf32>
    %c0_18 = arith.constant 0 : index
    %c0_19 = arith.constant 0 : index
    %c0_20 = arith.constant 0 : index
    %29 = vector.load %arg6[%c0_18, %c0_19, %c0_20] : memref<1x16x256xf32, #tpu.memory_space<vmem>>, vector<1x16x256xf32>
    tpu.vector_store %arg6[%c0_18, %c0_19, %c0_20], %28 {strides = array<i32>} : memref<1x16x256xf32, #tpu.memory_space<vmem>>, vector<1x16x256xf32>,
    return
  }
  func.func @transform_0(%arg0: i32) -> (i32, i32, i32) {
    %c0_i32 = arith.constant 0 : i32
    %c0_i32_0 = arith.constant 0 : i32
    %c0_i32_1 = arith.constant 0 : i32
    return %arg0, %c0_i32, %c0_i32_0 : i32, i32, i32
  }
  func.func @transform_1(%arg0: i32) -> (i32, i32) {
    %c0_i32 = arith.constant 0 : i32
    %c0_i32_0 = arith.constant 0 : i32
    %c0_i32_1 = arith.constant 0 : i32
    return %c0_i32, %c0_i32_0 : i32, i32
  }
  func.func @transform_2(%arg0: i32) -> (i32, i32) {
    %c0_i32 = arith.constant 0 : i32
    %c0_i32_0 = arith.constant 0 : i32
    %c0_i32_1 = arith.constant 0 : i32
    return %c0_i32, %c0_i32_0 : i32, i32
  }
  func.func @transform_3(%arg0: i32) -> (i32, i32) {
    %c0_i32 = arith.constant 0 : i32
    %c0_i32_0 = arith.constant 0 : i32
    %c0_i32_1 = arith.constant 0 : i32
    return %c0_i32, %c0_i32_0 : i32, i32
  }
  func.func @transform_4(%arg0: i32) -> (i32, i32) {
    %c0_i32 = arith.constant 0 : i32
    %c0_i32_0 = arith.constant 0 : i32
    %c0_i32_1 = arith.constant 0 : i32
    return %c0_i32, %c0_i32_0 : i32, i32
  }
  func.func @transform_5(%arg0: i32) -> (i32, i32, i32) {
    %c0_i32 = arith.constant 0 : i32
    %c0_i32_0 = arith.constant 0 : i32
    %c0_i32_1 = arith.constant 0 : i32
    return %arg0, %c0_i32, %c0_i32_0 : i32, i32, i32
  }
}

</mosaic_0001>

<bundles_post_ra>
// kernel: tpu_custom_call.1
= control target key start
LH: loop header
LB: loop body
LE: loop exit
PB: predicated region body
PF: predicated region fallthrough
CT: control target
= control target key end

     0   :  { %10 = vsyncpa [#allocation3], 0  ;;  %s827_s0 = inlined_call_operand.hbm [shape: f32[2,16,256], index: 0, kind: input, shape index: {}]   ;;  %s828_s1 = inlined_call_operand.vmem [shape: f32[16,4], index: 1, kind: input, shape index: {}]   ;;  %s829_s2 = inlined_call_operand.vmem [shape: f32[1,4], index: 2, kind: input, shape index: {}]   ;;  %s830_s3 = inlined_call_operand.vmem [shape: f32[4,16], index: 3, kind: input, shape index: {}]   ;;  %s831_s4 = inlined_call_operand.vmem [shape: f32[1,16], index: 4, kind: input, shape index: {}]   ;;  %s832_s5 = inlined_call_operand.hbm [shape: f32[2,16,256], index: 5, kind: output, shape index: {}]  }
   0x1   :  { %12 = vsyncpa [#allocation3 + $0x1], 0 }
   0x2   :  { %13 = vsyncpa [#allocation4], 0 }
   0x3   :  { %15 = vsyncpa [#allocation4 + $0x1], 0  ;;  %s665_s18 = smov 0   ;;  %s667_s19 = smov 0  }
   0x4   :  { %s669_s20 = smov 0   ;;  %s671_s21 = smov 0  }
   0x5 LB: > { %s686_s22 = sadd.s32 4294967295, %s629_s21   ;;  %s456_s23 = sadd.s32 4294967294, %s629_s21   ;;  %s629_s21 = sphi %s671_s21, %s842_s21   ;;  %s625_s20 = sphi %s669_s20, %s841_s20   ;;  %s621_s19 = sphi %s667_s19, %s840_s19   ;;  %s617_s18 = sphi %s665_s18, %s839_s18  }
   0x6   : > { %s690_s24 = sadd.s32 1, %s629_s21   ;;  %s28_s25 = sadd.s32 1, %s625_s20 }
   0x7   : > { %s25_s26 = ssub.s32 %s629_s21, %s690_s24  ;;  %p35_p0 = scmp.ne.s32.totalorder %s625_s20, %s621_s19 }
   0x8   : > { %p26_p1 = scmp.eq.s32.totalorder %s25_s26, 0  ;;  %p36_p2 = scmp.eq.s32.totalorder %s629_s21, 0 }
   0x9   : > { %p41_p3 = scmp.ne.s32.totalorder %s621_s19, %s617_s18  ;;  %p42_p4 = scmp.eq.s32.totalorder %s686_s22, 0 }
   0xa   : > { %s702_s27 = scalar_select %p26_p1, %s625_s20, %s28_s25  }
   0xb   : > { %p704_p5 = por %p36_p2, %p35_p0  ;;  %p708_p6 = por %p42_p4, %p41_p3 }
   0xc   : > { %p149_p7 = scmp.eq.s32.totalorder %s686_s22, 1  ;;  %p155_p8 = scmp.eq.s32.totalorder %s456_s23, 1 }
   0xd   : > { %p488_p10 = scmp.lt.s32.totalorder %s629_s21, 2  ;;  %s187_s7 = sand.u32 1, %s625_s20  }
   0xe   : > { %p715_p11 = por %p149_p7, %p35_p0  ;;  %p719_p12 = por %p155_p8, %p41_p3 }
   0xf   : > { %s474_s8 = sshll.u32 %s629_s21, 5  ;;  %s459_s9 = sshll.u32 %s187_s7, 5 }
  0x10   : > { %s196_s12 = scalar_lea.hbm %s827_s0, %s474_s8  ;;  %s191_s14 = scalar_lea.vmem [#allocation2], %s459_s9 }
  0x11   : > { %s197_s13 = sshll.u32 %s196_s12, 4  ;;  %s199_s15 = sshll.u32 %s191_s14, 4  ;;  %s198_s13 = int_to_ptr.hbm [resolvable:$true] %s197_s13  ;;  %s200_s15 = int_to_ptr.vmem [resolvable:$true] %s199_s15 }
  0x12   : > { %p730_p13 = pnand %p488_p10, %p704_p5  ;;  %p462_p0 = scmp.ge.s32.totalorder %s629_s21, 1 }
  0x13   : > { %p207_p1 = scmp.lt.s32.totalorder %s629_s21, 3  ;;  %s188_s17 = scalar_lea.sflag [#allocation3], %s187_s7 }
  0x14   : > { %s533_s23 = sshra.s32 %s198_s13, 4  ;;  %p537_p3 = pneg %p730_p13  ;;  %s534_s23 = int_to_ptr.hbm [resolvable:$true] %s533_s23 }
  0x15   : > { %s535_s25 = scalar_lea.hbm %s534_s23, 32  ;;  %s540_s28 = scalar_lea.hbm %s827_s0, 64 }
  0x16   : > { %p536_p2 = scmp.ne.s32.totalorder %s534_s23, %s535_s25  ;;  %p541_p5 = scmp.lt.s32.totalorder %s534_s23, %s827_s0 }
  0x17   : > { %p542_p8 = scmp.lt.s32.totalorder %s540_s28, %s535_s25 }
  0x18   : > { %p538_p4 = pnand %p537_p3, %p536_p2 }
  0x19   : > { %p543_p10 = por %p542_p8, %p541_p5 }
  0x1a   : > { %p539_p7 = pneg %p538_p4 }
  0x1c   : > { %p544_p9 = pnand %p543_p10, %p539_p7 }
  0x1e   : > { %547 = shalt.err (!%p544_p9)
}
  0x1f   : > { %s631_s7 = smov 256   ;;  %s632_s11 = smov 16  }
  0x20   : > { %483 = dma.hbm_to_vmem [thread:$0]  (!%p730_p13), %s198_s13, 512, %s200_s15, %s188_s17, %s631_s7, %s631_s7, %s632_s11  }
  0x21   : > { %p208_p2 = pnand %p462_p0, %p207_p1 }
  0x22   : > { %s751_s12 = sand.u32 (!%p208_p2), 1, %s621_s19  }
  0x23   : > { %211 = sbr.rel (%p208_p2) target bundleno = 607 (0x25f), region = 40  ;;  %s463_s14 = sshll.u32 (!%p208_p2), %s751_s12, 5 }
  0x24   : > { %s214_s23 = scalar_lea.sflag (!%p208_p2), [#allocation3], %s751_s12  ;;  %s217_s25 = scalar_lea.vmem (!%p208_p2), [#allocation2], %s463_s14 }
  0x28   : > { %608 = dma.done.wait (%p708_p6), %s214_s23, 512  }
  0x29   : > { %610 = vsyncadd (%p708_p6), %s214_s23, 4294966784  ;;  %v761_v0 = vld [vmem:[%s217_s25] sm:$0xff]  ;;  %v763_v1 = vld [vmem:[%s217_s25 + $0x8] sm:$0xff]  ;;  %v262_v9 = vlaneseq  ;;  %vm267_vm0 = vcmask 130112   ;;  %vm269_vm1 = vcmask 130048   ;;  %vm318_vm2 = vcmask 1043456  }
  0x2a   : > { %v249_v2 = vadd.f32 %v763_v1, %v761_v0  ;;  %v767_v3 = vld [vmem:[%s217_s25 + $0x10] sm:$0xff]  ;;  %v769_v4 = vld [vmem:[%s217_s25 + $0x18] sm:$0xff]  ;;  %v258_v6 = vld [vmem:[%s828_s1 + $0x8] sm:$0xff]  ;;  %vm314_vm7 = vcmask 31744   ;;  %s244_s7 = scalar_lea.vmem [#allocation5], %s463_s14  ;;  %s475_s11 = sshll.u32 %s686_s22, 5 }
  0x2b   : > { %v252_v5 = vadd.f32 %v769_v4, %v767_v3  ;;  %286 = vmatpush.msra.mxu0 %v258_v6  ;;  %v257_v7 = vld [vmem:[%s828_s1] sm:$0xff]  ;;  %v263_v10 = vand.u32 127, %v262_v9  ;;  %v348_v36 = vshrl.u32 %v262_v9, 7  ;;  %s379_s13 = scalar_lea.hbm %s832_s5, %s475_s11  ;;  %s380_s15 = sshll.u32 %s244_s7, 4  ;;  %s381_s15 = int_to_ptr.vmem [resolvable:$true] %s380_s15 }
  0x2c   : > { %250 = vadd.xlane.f32.xlu0 %v249_v2  ;;  %v259_v18 = vld [vmem:[%s829_s2] sm:$0x1]  ;;  %s382_s29 = sshll.u32 %s379_s13, 4  ;;  %s368_s14 = scalar_lea.sflag [#allocation4], %s751_s12  ;;  %s383_s29 = int_to_ptr.hbm [resolvable:$true] %s382_s29 }
  0x2d   : > { %287 = vmatpush.msra.mxu0 %v257_v7  ;;  %v265_v12 = vadd.s32 4294967288, %v263_v10  ;;  %v312_v19 = vld [vmem:[%s830_s3] sm:$0xf]  ;;  %526 = vset.pattern.permute.xlu1 %v348_v36  ;;  %v355_v37 = vadd.s32 8, %v348_v36  ;;  %s577_s16 = sshra.s32 %s383_s29, 4  ;;  %s583_s8 = scalar_lea.hbm %s832_s5, 64  ;;  %s578_s16 = int_to_ptr.hbm [resolvable:$true] %s577_s16 }
  0x2e   : > { %467 = vmatpush.msk.msra.mxu1 %vm318_vm2, %v312_v19  ;;  %v313_v38 = vld [vmem:[%s831_s4] sm:$0x1]  ;;  %s579_s22 = scalar_lea.hbm %s578_s16, 32  ;;  %p584_p0 = scmp.lt.s32.totalorder %s578_s16, %s832_s5 }
  0x2f   : > { %528 = vset.pattern.permute.xlu0 %v355_v37  ;;  %p580_p6 = scmp.ne.s32.totalorder %s578_s16, %s579_s22  ;;  %p585_p1 = scmp.lt.s32.totalorder %s583_s8, %s579_s22 }
  0x31   : > { %p581_p9 = pnand %p580_p6, %p715_p11  ;;  %p586_p3 = por %p585_p1, %p584_p0 }
  0x33   : > { %p582_p13 = pneg %p581_p9 }
  0x34   : > { %253 = vadd.xlane.f32.xlu0 %v252_v5 }
  0x35   : > { %p587_p4 = pnand %p586_p3, %p582_p13 }
  0x9f   : > { %v251_v8 = vpop.xlane.xlu0 %250 }
  0xa0   : > { %v255_v11 = vmul.f32 0.00390625, %v251_v8 }
  0xa2   : > { %v264_v15 = vperm.slane %v255_v11, %v263_v10 }
  0xa7   : > { %v254_v13 = vpop.xlane.xlu0 %253 }
  0xa8   : > { %v256_v14 = vmul.f32 0.00390625, %v254_v13 }
  0xaa   : > { %v266_v16 = vperm.slane %v256_v14, %v265_v12 }
  0xac   : > { %v268_v17 = vsel %vm267_vm0, %v266_v16, %v264_v15 }
  0xad   : > { %465 = vmatmul.msk.f32.vlgmr.msra.gmra.mxu0 %vm269_vm1, %v268_v17 }
 0x12a   : > { %v289_v20 = vpop.f32.mrf.mxu0 }
 0x12b   : > { %v290_v21 = vadd.f32 %v289_v20, %v259_v18 }
 0x12d   : > { %v466_v22 = vmul.f32 -1.442695, %v290_v21 }
 0x12f   : > { %529 = vpow2.f32 %v466_v22 }
 0x135   : > { %v530_v23 = vpop.eup %529 }
 0x136   : > { %v295_v24 = vadd.f32 1.0, %v530_v23 }
 0x138   : > { %531 = vrcp.f32 %v295_v24  ;;  %v307_v28 = vand.u32 2147483648, %v295_v24  ;;  %v305_v30 = vand.u32 2147483647, %v295_v24  ;;  %vm301_vm4 = vweird.f32 %v295_v24 }
 0x13a   : > { %v308_v32 = vor.u32 1.1754944e-38, %v307_v28  ;;  %vm306_vm6 = vcmp.eq.f32.partialorder %v305_v30, 8.507059e+37 }
 0x13e   : > { %v532_v25 = vpop.eup %531 }
 0x13f   : > { %v297_v26 = vmul.f32 %v532_v25, %v295_v24  ;;  %vm302_vm3 = vweird.f32 %v532_v25 }
 0x140   : > { %vm303_vm5 = vmor %vm301_vm4, %vm302_vm3 }
 0x141   : > { %v298_v27 = vsub.f32 1.0, %v297_v26 }
 0x143   : > { %v299_v29 = vmul.f32 %v532_v25, %v298_v27 }
 0x145   : > { %v300_v31 = vadd.f32 %v532_v25, %v299_v29 }
 0x147   : > { %v304_v33 = vsel %vm303_vm5, %v532_v25, %v300_v31 }
 0x148   : > { %v309_v34 = vsel %vm306_vm6, %v308_v32, %v304_v33 }
 0x149   : > { %v311_v35 = vmul.f32 %v309_v34, %v290_v21 }
 0x14b   : > { %468 = vmatmul.msk.f32.vlgmr.msra.gmra.mxu1 %vm314_vm7, %v311_v35 }
 0x1c8   : > { %v339_v39 = vpop.f32.mrf.mxu1 }
 0x1c9   : > { %v340_v40 = vadd.f32 %v339_v39, %v313_v38 }
 0x1cb   : > { %v342_v41 = vadd.f32 3.0, %v340_v40 }
 0x1cd   : > { %v343_v42 = vmax.f32 %v342_v41, 0.0 }
 0x1cf   : > { %v344_v43 = vmin.f32 %v343_v42, 6.0 }
 0x1d1   : > { %v345_v44 = vmul.f32 0.16666667, %v344_v43 }
 0x1d3   : > { %v346_v45 = vperm.slane %v345_v44, 0 }
 0x1d5   : > { %351 = vperm.xlu1 %526, %v346_v45  }
 0x1dd   : > { %527 = vset.pattern.permute.xlu1 %v355_v37 }
 0x1e5   : > { %357 = vperm.xlu1 %527, %v346_v45  }
 0x247   : > { %v352_v46 = vpop.permute.xlu1 %351 }
 0x248   : > { %v359_v47 = vmul.f32 %v352_v46, %v761_v0  ;;  %v360_v48 = vmul.f32 %v352_v46, %v763_v1 }
 0x24a   : > { %363 = vst [vmem:[%s244_s7] sm:$0xff] %v359_v47 }
 0x24b   : > { %364 = vst [vmem:[%s244_s7 + $0x8] sm:$0xff] %v360_v48 }
 0x257   : > { %v358_v49 = vpop.permute.xlu1 %357 }
 0x258   : > { %v361_v50 = vmul.f32 %v358_v49, %v767_v3  ;;  %v362_v51 = vmul.f32 %v358_v49, %v769_v4 }
 0x25a   : > { %365 = vst [vmem:[%s244_s7 + $0x10] sm:$0xff] %v361_v50 }
 0x25b   : > { %366 = vst [vmem:[%s244_s7 + $0x18] sm:$0xff] %v362_v51 }
 0x25c   : > { %590 = shalt.err (!%p587_p4)
}
 0x25d   : > { %s633_s12 = smov 256   ;;  %s634_s10 = smov 16  }
 0x25e   : > { %478 = dma.vmem_to_hbm [thread:$0]  (%p715_p11), %s381_s15, 512, %s383_s29, %s368_s14, %s633_s12, %s633_s12, %s634_s10  }
 0x25f PF: > { %s397_s7 = sand.u32 1, %s617_s18   ;;  %p838_p7 = scmp.ge.s32.totalorder %s629_s21, 2 }
 0x260   : > { %s398_s11 = scalar_lea.sflag [#allocation4], %s397_s7 }
 0x261   : > { %p485_p5 = pnand %p838_p7, %p719_p12 }
 0x263   : > { %p486_p8 = pneg %p485_p5 }
 0x265   : > { %612 = dma.done.wait (%p486_p8), %s398_s11, 512  }
 0x266   : > { %614 = vsyncadd (%p486_p8), %s398_s11, 4294966784  ;;  %p18_p10 = scmp.ge.s32.totalorder %s690_s24, 4   ;;  %s839_s18 = smov %s621_s19 }
 0x267   : > { %s840_s19 = smov %s625_s20  ;;  %s841_s20 = smov %s702_s27 }
 0x268   : > { %s842_s21 = smov %s690_s24  ;;  %20 = sbr.rel (!%p18_p10) target bundleno = 5 (0x5), region = 85 }
 0x26d   :  { %404 = vsyncpa [#allocation3], 1 }
 0x26e   :  { %406 = vsyncpa [#allocation3 + $0x1], 1 }
 0x26f   :  { %407 = vsyncpa [#allocation4], 1 }
 0x270   :  { %409 = vsyncpa [#allocation4 + $0x1], 1 }

</bundles_post_ra>
